<compile_context>
chip_gen: v5e
topology: v5e:2x2
jax: 0.10.0
libtpu: 0.0.40
codegen_flags: <defaults>
</compile_context>

<pallas_src>
import math

import jax
import jax.numpy as jnp
from jax.experimental import pallas as pl
from jax.experimental.pallas import tpu as pltpu


# ------------------------------ Pallas kernel -------------------------------

def _dc_combine_kernel(d_ref, fchi_ref, fphi_ref, k_ref):
    """K_c = D_c * (D_c * Fchi_c - Fphi_c) for one (channel, batch, row-block)."""
    d = d_ref[...]
    k_ref[...] = d * (d * fchi_ref[...] - fphi_ref[...])


def _choose_layout(spatial):
    """Flatten the spatial volume into a lane-dense (rows, cols) layout.

    cols is the largest of {1024, 512, 256, 128} dividing the volume (free
    row-major reshape, unmasked lane-dense stores).  If none divides, fall
    back to the natural trailing dim -- still copy-free, just lane-underused.
    """
    total = math.prod(spatial)
    for cols in (1024, 512, 256, 128):
        if total % cols == 0:
            return total // cols, cols
    return total // spatial[-1], spatial[-1]


def _choose_tm(rows, cols, leading_steps):
    """Row tile: ~2 MiB per f32 operand block (measured ~85% of HBM roofline);
    4 operands x 2 buffers ~= 16 MiB working set.  Keep >= ~8 total grid steps
    when possible so megacore sharding / pipeline priming have work (v7x)."""
    tm = max(8, ((512 * 1024) // cols // 8) * 8)
    if rows <= tm:
        return rows                         # full-dim block is always legal
    while leading_steps * pl.cdiv(rows, tm) < 8 and tm >= 16:
        tm = max(8, (tm // 2 // 8) * 8)
    return tm


def dc_combine(D, f_all):
    """Fused k-space combine.

    D:     [B, 2, X, Y, Z] float32, channel = (real, imag) dipole kernel.
    f_all: [2, B, X, Y, Z] complex64, f_all[0] = fft3(chi), f_all[1] = fft3(phi).
    Returns [B, X, Y, Z] complex64 with
        Re(K) = D_r * (D_r*Re(Fchi) - Re(Fphi))
        Im(K) = D_i * (D_i*Im(Fchi) - Im(Fphi))
    """
    B = D.shape[0]
    spatial = tuple(D.shape[2:])
    rows, cols = _choose_layout(spatial)
    tm = _choose_tm(rows, cols, leading_steps=2 * B)
    grid = (2, B, pl.cdiv(rows, tm))        # (channel, batch, row-block)

    # One fused XLA pass: complex64 -> separated (real, imag) planes.
    f_sep = jnp.stack([jnp.real(f_all), jnp.imag(f_all)], axis=0)
    f_sep = f_sep.reshape(2, 2, B, rows, cols)          # free reshape
    d4 = D.reshape(B, 2, rows, cols)                    # free reshape (no transpose)

    d_spec = pl.BlockSpec((None, None, tm, cols),
                          lambda c, b, i: (b, c, i, 0))
    fchi_spec = pl.BlockSpec((None, None, None, tm, cols),
                             lambda c, b, i: (c, 0, b, i, 0))
    fphi_spec = pl.BlockSpec((None, None, None, tm, cols),
                             lambda c, b, i: (c, 1, b, i, 0))
    out_spec = pl.BlockSpec((None, None, tm, cols),
                            lambda c, b, i: (c, b, i, 0))

    k = pl.pallas_call(
        _dc_combine_kernel,
        out_shape=jax.ShapeDtypeStruct((2, B, rows, cols), jnp.float32),
        grid_spec=pltpu.PrefetchScalarGridSpec(
            num_scalar_prefetch=0,
            grid=grid,
            in_specs=[d_spec, fchi_spec, fphi_spec],
            out_specs=out_spec),
        compiler_params=pltpu.CompilerParams(
            dimension_semantics=("parallel", "parallel", "parallel"),
            vmem_limit_bytes=48 * 1024 * 1024),
    )(d4, f_sep, f_sep)

    return jax.lax.complex(k[0], k[1]).reshape((B,) + spatial)


# ------------------------------ forward pass --------------------------------

def data_consistency(chi, phi, D):
    """chi, phi, D: [B, 2, X, Y, Z] float32; channel dim = (real, imag).

    DC = ifft3(D*D*fft3(chi)) - ifft3(D*fft3(phi))
       = ifft3( D*(D*fft3(chi) - fft3(phi)) )     (IFFT linearity; fused)
    """
    axes = (-3, -2, -1)
    chi_c = jax.lax.complex(chi[:, 0], chi[:, 1])
    phi_c = jax.lax.complex(phi[:, 0], phi[:, 1])
    # One batched forward FFT over [2, B, X, Y, Z] instead of two dispatches.
    f_all = jnp.fft.fftn(jnp.stack([chi_c, phi_c], axis=0), axes=axes)

    k = dc_combine(D, f_all)                  # Pallas-fused k-space combine
    dc = jnp.fft.ifftn(k, axes=axes)          # single fused inverse FFT
    # [B, X, Y, Z] complex -> [B, 2, X, Y, Z] with channel = (real, imag)
    return jnp.stack([jnp.real(dc), jnp.imag(dc)], axis=1)


# ------------------------ pure-JAX reference (check) -------------------------

def data_consistency_ref(chi, phi, D):
    """Literal translation of the PyTorch forward (two separate IFFTs)."""
    axes = (1, 2, 3)

    def fft_ri(x_ri):                       # [..., X, Y, Z, 2] -> same
        c = jnp.fft.fftn(jax.lax.complex(x_ri[..., 0], x_ri[..., 1]), axes=axes)
        return jnp.stack([jnp.real(c), jnp.imag(c)], axis=-1)

    def ifft_ri(x_ri):
        c = jnp.fft.ifftn(jax.lax.complex(x_ri[..., 0], x_ri[..., 1]), axes=axes)
        return jnp.stack([jnp.real(c), jnp.imag(c)], axis=-1)

    chi_l = jnp.moveaxis(chi, 1, -1)
    phi_l = jnp.moveaxis(phi, 1, -1)
    d_l = jnp.moveaxis(D, 1, -1)
    dc = ifft_ri(d_l * d_l * fft_ri(chi_l)) - ifft_ri(d_l * fft_ri(phi_l))
    return jnp.moveaxis(dc, -1, 1)


# ---------------------------------- main -------------------------------------

if __name__ == "__main__":
    key = jax.random.PRNGKey(0)
    k1, k2, k3 = jax.random.split(key, 3)

    # Small shapes consistent with the module: [batch, channel=2(re,im), x, y, z]
    B, X, Y, Z = 2, 16, 16, 16
    chi = jax.random.normal(k1, (B, 2, X, Y, Z), jnp.float32)
    phi = jax.random.normal(k2, (B, 2, X, Y, Z), jnp.float32)
    D = jax.random.normal(k3, (B, 2, X, Y, Z), jnp.float32)

    out = jax.jit(data_consistency)(chi, phi, D)
    out = jax.block_until_ready(out)

    assert out.shape == (B, 2, X, Y, Z)
    assert bool(jnp.all(jnp.isfinite(out)))

    ref = data_consistency_ref(chi, phi, D)
    max_err = float(jnp.max(jnp.abs(out - ref)))
    assert max_err < 1e-3, f"mismatch vs reference: {max_err}"

    print("KERNEL_OK")
</pallas_src>

<mosaic_0001>
module attributes {stable_mosaic.version = 11 : i64} {
  func.func @_dc_combine_kernel(%arg0: i32, %arg1: i32, %arg2: i32, %arg3: memref<1x1x4x1024xf32, #tpu.memory_space<vmem>>, %arg4: memref<1x1x1x4x1024xf32, #tpu.memory_space<vmem>>, %arg5: memref<1x1x1x4x1024xf32, #tpu.memory_space<vmem>>, %arg6: memref<1x1x4x1024xf32, #tpu.memory_space<vmem>>) attributes {dimension_semantics = [#tpu.dimension_semantics<parallel>, #tpu.dimension_semantics<parallel>, #tpu.dimension_semantics<parallel>], iteration_bounds = array<i64: 2, 2, 1>, scalar_prefetch = 0 : i64, scratch_operands = 0 : i64, tpu.core_type = #tpu.core_type<tc>, window_params = [{transform_indices = @transform_0, window_bounds = array<i64: 1, 1, 4, 1024>}, {transform_indices = @transform_1, window_bounds = array<i64: 1, 1, 1, 4, 1024>}, {transform_indices = @transform_2, window_bounds = array<i64: 1, 1, 1, 4, 1024>}, {transform_indices = @transform_3, window_bounds = array<i64: 1, 1, 4, 1024>}]} {
    %c0 = arith.constant 0 : index
    %c0_0 = arith.constant 0 : index
    %c0_1 = arith.constant 0 : index
    %c0_2 = arith.constant 0 : index
    %0 = vector.load %arg3[%c0, %c0_0, %c0_1, %c0_2] : memref<1x1x4x1024xf32, #tpu.memory_space<vmem>>, vector<1x1x4x1024xf32>
    %1 = vector.shape_cast %0 : vector<1x1x4x1024xf32> to vector<4x1024xf32>
    %c0_3 = arith.constant 0 : index
    %c0_4 = arith.constant 0 : index
    %c0_5 = arith.constant 0 : index
    %c0_6 = arith.constant 0 : index
    %c0_7 = arith.constant 0 : index
    %2 = vector.load %arg4[%c0_3, %c0_4, %c0_5, %c0_6, %c0_7] : memref<1x1x1x4x1024xf32, #tpu.memory_space<vmem>>, vector<1x1x1x4x1024xf32>
    %3 = vector.shape_cast %2 : vector<1x1x1x4x1024xf32> to vector<4x1024xf32>
    %4 = arith.mulf %1, %3 : vector<4x1024xf32>
    %c0_8 = arith.constant 0 : index
    %c0_9 = arith.constant 0 : index
    %c0_10 = arith.constant 0 : index
    %c0_11 = arith.constant 0 : index
    %c0_12 = arith.constant 0 : index
    %5 = vector.load %arg5[%c0_8, %c0_9, %c0_10, %c0_11, %c0_12] : memref<1x1x1x4x1024xf32, #tpu.memory_space<vmem>>, vector<1x1x1x4x1024xf32>
    %6 = vector.shape_cast %5 : vector<1x1x1x4x1024xf32> to vector<4x1024xf32>
    %7 = arith.subf %4, %6 : vector<4x1024xf32>
    %8 = arith.mulf %1, %7 : vector<4x1024xf32>
    %c0_13 = arith.constant 0 : index
    %c0_14 = arith.constant 0 : index
    %c0_15 = arith.constant 0 : index
    %c0_16 = arith.constant 0 : index
    %9 = vector.load %arg6[%c0_13, %c0_14, %c0_15, %c0_16] : memref<1x1x4x1024xf32, #tpu.memory_space<vmem>>, vector<1x1x4x1024xf32>
    %10 = vector.shape_cast %9 : vector<1x1x4x1024xf32> to vector<4x1024xf32>
    %11 = vector.shape_cast %8 : vector<4x1024xf32> to vector<1x1x4x1024xf32>
    tpu.vector_store %arg6[%c0_13, %c0_14, %c0_15, %c0_16], %11 {strides = array<i32>} : memref<1x1x4x1024xf32, #tpu.memory_space<vmem>>, vector<1x1x4x1024xf32>,
    return
  }
  func.func @transform_0(%arg0: i32, %arg1: i32, %arg2: i32) -> (i32, i32, i32, i32) {
    %c0_i32 = arith.constant 0 : i32
    %c0_i32_0 = arith.constant 0 : i32
    return %arg1, %arg0, %arg2, %c0_i32 : i32, i32, i32, i32
  }
  func.func @transform_1(%arg0: i32, %arg1: i32, %arg2: i32) -> (i32, i32, i32, i32, i32) {
    %c0_i32 = arith.constant 0 : i32
    %c0_i32_0 = arith.constant 0 : i32
    %c0_i32_1 = arith.constant 0 : i32
    return %arg0, %c0_i32, %arg1, %arg2, %c0_i32_0 : i32, i32, i32, i32, i32
  }
  func.func @transform_2(%arg0: i32, %arg1: i32, %arg2: i32) -> (i32, i32, i32, i32, i32) {
    %c1_i32 = arith.constant 1 : i32
    %c0_i32 = arith.constant 0 : i32
    %c0_i32_0 = arith.constant 0 : i32
    return %arg0, %c1_i32, %arg1, %arg2, %c0_i32 : i32, i32, i32, i32, i32
  }
  func.func @transform_3(%arg0: i32, %arg1: i32, %arg2: i32) -> (i32, i32, i32, i32) {
    %c0_i32 = arith.constant 0 : i32
    %c0_i32_0 = arith.constant 0 : i32
    return %arg0, %arg1, %arg2, %c0_i32 : i32, i32, i32, i32
  }
}

</mosaic_0001>

<bundles_post_ra>
// kernel: data_consistency.1
= control target key start
LH: loop header
LB: loop body
LE: loop exit
PB: predicated region body
PF: predicated region fallthrough
CT: control target
= control target key end

     0   :  { %s665_s12 = smov 0   ;;  %s667_s13 = smov 0   ;;  %s722_s0 = inlined_call_operand.vmem [shape: f32[2,2,4,1024], index: 0, kind: input, shape index: {}]   ;;  %s723_s1 = inlined_call_operand.vmem [shape: f32[2,2,2,4,1024], index: 1, kind: input, shape index: {}, may-alias: {1,2}]   ;;  %s724_s2 = inlined_call_operand.vmem [shape: f32[2,2,2,4,1024], index: 2, kind: input, shape index: {}, may-alias: {1,2}]   ;;  %s725_s3 = inlined_call_operand.vmem [shape: f32[2,2,4,1024], index: 3, kind: output, shape index: {}]  }
   0x1   :  { %s669_s14 = smov 0   ;;  %s671_s15 = smov 0  }
   0x2   :  { %s673_s16 = smov 0  }
   0x3 LB: > { %s28_s17 = sadd.s32 1, %s635_s14  ;;  %s32_s18 = sadd.s32 1, %s639_s15  ;;  %s643_s16 = sphi %s673_s16, %s13_s16   ;;  %s639_s15 = sphi %s671_s15, %s729_s15   ;;  %s635_s14 = sphi %s669_s14, %s728_s14   ;;  %s631_s13 = sphi %s667_s13, %s727_s13   ;;  %s627_s12 = sphi %s665_s12, %s726_s12  }
   0x4   : > { %p30_p0 = scmp.ge.s32.totalorder %s28_s17, 2  ;;  %p546_p1 = scmp.ge.s32.totalorder %s643_s16, 1 }
   0x5   : > { %p217_p2 = scmp.lt.s32.totalorder %s643_s16, 5 }
   0x6   : > { %s731_s17 = smov (%p30_p0, %s28_s17), 0  ;;  %s733_s18 = smov (!%p30_p0, %s32_s18), %s639_s15 }
   0x7   : > { %p218_p3 = pnand %p546_p1, %p217_p2  ;;  %p34_p4 = scmp.ge.s32.totalorder %s733_s18, 2 }
   0x8   : > { %p284_p5 = scmp.lt.s32.totalorder (!%p218_p3), %s627_s12, 1  ;;  %p286_p6 = scmp.lt.s32.totalorder (!%p218_p3), %s631_s13, 1 }
   0x9   : > { %s735_s18 = smov (%p34_p4, %s733_s18), 0  ;;  %221 = sbr.rel (%p218_p3) target bundleno = 32 (0x20), region = 32 }
   0xe   : > { %s737_s12 = smov (!%p284_p5, %s627_s12), 1  ;;  %s739_s13 = smov (!%p286_p6, %s631_s13), 1 }
   0xf   : > { %s548_s19 = sshll.u32 %s737_s12, 4  ;;  %s550_s20 = sshll.u32 %s737_s12, 3 }
  0x10   : > { %s547_s21 = sshll.u32 %s739_s13, 3  ;;  %s551_s22 = sshll.u32 %s739_s13, 5 }
  0x11   : > { %s294_s23 = sadd.s32 %s548_s19, %s547_s21  ;;  %s307_s24 = sadd.s32 %s551_s22, %s550_s20 }
  0x12   : > { %s549_s25 = sshll.u32 %s294_s23, 2  ;;  %s552_s26 = sshll.u32 %s307_s24, 2 }
  0x13   : > { %s296_s29 = scalar_lea.vmem %s722_s0, %s549_s25  ;;  %s309_s5 = scalar_lea.vmem %s723_s1, %s552_s26 }
  0x14   : > { %s473_s8 = scalar_lea.vmem %s724_s2, %s552_s26  ;;  %s557_s9 = sshll.u32 %s739_s13, 4  ;;  %v337_v0 = vld [vmem:[%s296_s29] sm:$0xff]  ;;  %v338_v2 = vld [vmem:[%s296_s29 + $0x8] sm:$0xff]  ;;  %v339_v8 = vld [vmem:[%s296_s29 + $0x10] sm:$0xff] }
  0x15   : > { %v341_v1 = vld [vmem:[%s309_s5] sm:$0xff]  ;;  %s334_s10 = sadd.s32 %s557_s9, %s550_s20  ;;  %v342_v5 = vld [vmem:[%s309_s5 + $0x8] sm:$0xff]  ;;  %v343_v9 = vld [vmem:[%s309_s5 + $0x10] sm:$0xff] }
  0x16   : > { %v345_v3 = vmul.f32 %v341_v1, %v337_v0  ;;  %v559_v4 = vld [vmem:[%s473_s8 + $0x40] sm:$0xff]  ;;  %v560_v6 = vld [vmem:[%s473_s8 + $0x48] sm:$0xff]  ;;  %s558_s11 = sshll.u32 %s334_s10, 2  ;;  %v346_v7 = vmul.f32 %v342_v5, %v338_v2  ;;  %v561_v10 = vld [vmem:[%s473_s8 + $0x50] sm:$0xff]  ;;  %v347_v12 = vmul.f32 %v343_v9, %v339_v8 }
  0x17   : > { %v340_v13 = vld [vmem:[%s296_s29 + $0x18] sm:$0xff]  ;;  %s336_s19 = scalar_lea.vmem %s725_s3, %s558_s11 }
  0x18   : > { %v353_v11 = vsub.f32 %v345_v3, %v559_v4  ;;  %v344_v14 = vld [vmem:[%s309_s5 + $0x18] sm:$0xff]  ;;  %v354_v16 = vsub.f32 %v346_v7, %v560_v6  ;;  %v355_v19 = vsub.f32 %v347_v12, %v561_v10 }
  0x19   : > { %v562_v15 = vld [vmem:[%s473_s8 + $0x58] sm:$0xff]  ;;  %v348_v17 = vmul.f32 %v344_v14, %v340_v13 }
  0x1a   : > { %v357_v18 = vmul.f32 %v353_v11, %v337_v0  ;;  %v358_v20 = vmul.f32 %v354_v16, %v338_v2  ;;  %v359_v22 = vmul.f32 %v355_v19, %v339_v8 }
  0x1b   : > { %v356_v21 = vsub.f32 %v348_v17, %v562_v15 }
  0x1c   : > { %361 = vst [vmem:[%s336_s19] sm:$0xff] %v357_v18 }
  0x1d   : > { %362 = vst [vmem:[%s336_s19 + $0x8] sm:$0xff] %v358_v20  ;;  %v360_v23 = vmul.f32 %v356_v21, %v340_v13 }
  0x1e   : > { %363 = vst [vmem:[%s336_s19 + $0x10] sm:$0xff] %v359_v22 }
  0x1f   : > { %364 = vst [vmem:[%s336_s19 + $0x18] sm:$0xff] %v360_v23 }
  0x20 PF: > { %s13_s16 = sadd.s32 1, %s643_s16   ;;  %s726_s12 = smov %s635_s14 }
  0x21   : > { %p10_p7 = scmp.ge.s32.totalorder %s13_s16, 6   ;;  %s727_s13 = smov %s639_s15 }
  0x22   : > { %s728_s14 = smov %s731_s17  ;;  %s729_s15 = smov %s735_s18 }
  0x23   :  { %12 = sbr.rel (!%p10_p7) target bundleno = 3 (0x3), region = 68 }

</bundles_post_ra>
